<compile_context>
chip_gen: v6e
topology: v6e:2x2x1
jax: 0.10.0
libtpu: 0.0.40
codegen_flags: <defaults>
</compile_context>

<pallas_src>
import jax
import jax.numpy as jnp
import numpy as np
from jax.experimental import pallas as pl
from jax.experimental.pallas import tpu as pltpu


# ----------------------------------------------------------------------------
# Fused non-local block kernel: one (batch-tile, N-tile) block per grid step.
# ----------------------------------------------------------------------------
def _nonlocal_kernel(x_ref, xs_ref, wg_ref, ww_ref, wb_ref, o_ref):
    f32 = jnp.float32
    Bt, C, TN = x_ref.shape
    Ns = xs_ref.shape[-1] // 4

    wg = wg_ref[...]                                   # (Ci, C)  g 1x1-conv weight
    ww = ww_ref[...]                                   # (C, Ci)  W 1x1-conv (BN folded)
    wb = jnp.broadcast_to(wb_ref[...], (C, TN))        # (C, TN)  folded bias (hoisted)

    def corner_max(a):                                 # max over the 4 pool corners
        return jnp.maximum(jnp.maximum(a[:, 0:Ns], a[:, Ns:2 * Ns]),
                           jnp.maximum(a[:, 2 * Ns:3 * Ns], a[:, 3 * Ns:4 * Ns]))

    for b in range(Bt):                                # small, unrolled batch tile
        slab = xs_ref[b]                               # (C, 4*Ns) corner slab
        xt = x_ref[b]                                  # (C, TN)   theta / residual tile

        # phi_x = MaxPool(x); g_x = MaxPool(conv_g(x)) via ONE matmul over all
        # 4 corners (1x1 conv commutes with corner extraction; bias folded away).
        g4 = jnp.dot(wg, slab, preferred_element_type=f32)        # (Ci, 4*Ns)
        gx = corner_max(g4)                                        # (Ci, Ns)
        phi = corner_max(slab)                                     # (C,  Ns)

        # f = theta @ phi: contract on the channel dim -> no transpose materialized.
        f = jax.lax.dot_general(xt, phi, (((0,), (0,)), ((), ())),
                                preferred_element_type=f32)        # (TN, Ns)
        m = jnp.max(f, axis=-1, keepdims=True)
        e = jnp.exp(f - m)
        probs = e / jnp.sum(e, axis=-1, keepdims=True)             # exact softmax

        # W(y) = (W_eff @ g_x) @ probs^T ; z = W(y) + b_total + x
        wgx = jnp.dot(ww, gx, preferred_element_type=f32)          # (C, Ns)
        wy = jax.lax.dot_general(wgx, probs, (((1,), (1,)), ((), ())),
                                 preferred_element_type=f32)       # (C, TN)
        o_ref[b] = (wy + wb + xt).astype(o_ref.dtype)


# ----------------------------------------------------------------------------
# Wrapper: layout glue (corner slab, BN + bias folding), tile selection,
# and a single pallas_call.
# ----------------------------------------------------------------------------
def nonlocal_block_forward(x, params):
    B, C, T, H, W = x.shape
    assert H % 2 == 0 and W % 2 == 0, "crop odd H/W first (MaxPool3d floor-drops them)"
    Ci = params["wg"].shape[0]
    N = T * H * W
    Hs, Ws = H // 2, W // 2
    Ns = T * Hs * Ws

    # theta / residual stream: contiguous reshape, no HBM pass.
    x_flat = x.reshape(B, C, N)

    # Corner slab, channel-major, corner-major on the last axis:
    #   slab[b, c, (2*dh+dw)*Ns + s] = x[b, c, t, 2*h2+dh, 2*w2+dw]
    xr = x.reshape(B, C, T, Hs, 2, Ws, 2)
    slab = jnp.transpose(xr, (0, 1, 4, 6, 2, 3, 5)).reshape(B, C, 4 * Ns)

    # Fold inference BatchNorm into the W 1x1 conv, then fold the g-conv bias into
    # the output bias (softmax rows sum to 1, so y picks up bg exactly once).
    s = params["gamma"] * jax.lax.rsqrt(params["var"] + 1e-5)
    ww = (params["w1"] * s[:, None]).astype(jnp.float32)
    wb = s * (params["b1"] - params["mean"]) + params["beta"] + ww @ params["bg"]
    wb = wb.reshape(C, 1)

    # ---- tile selection (keep per-step VMEM ~<=12 MiB: safe on v5e/v6e/v7x) ----
    itemsize = 4
    budget = 12 * 1024 * 1024

    if N % 128 == 0:                      # lane-dense query tile, multiple of 128
        TN = 128
        for cand in (2048, 1024, 512, 256):
            if N % cand == 0 and cand * Ns * itemsize <= budget // 2:
                TN = cand
                break
    else:
        TN = N                            # tiny / irregular maps: single full tile

    def per_batch_bytes(tn):
        io = 2 * (C * tn) * 2 + (C * 4 * Ns) * 2          # x/out + slab (double-buffered)
        tmp = tn * Ns * 2 + (Ci + C) * 5 * Ns              # f/probs + g/phi temporaries
        return (io + tmp) * itemsize

    Bt = 1
    for d in range(B, 0, -1):             # largest divisor of B that fits the budget
        if B % d == 0 and d * per_batch_bytes(TN) <= budget:
            Bt = d
            break

    grid = (B // Bt, N // TN)

    act_spec = pl.BlockSpec((Bt, C, TN), lambda i, j: (i, 0, j))
    slab_spec = pl.BlockSpec((Bt, C, 4 * Ns), lambda i, j: (i, 0, 0))  # DMA skipped across j

    out = pl.pallas_call(
        _nonlocal_kernel,
        out_shape=jax.ShapeDtypeStruct((B, C, N), x.dtype),
        grid=grid,
        in_specs=[
            act_spec,
            slab_spec,
            pl.BlockSpec((Ci, C), lambda i, j: (0, 0)),
            pl.BlockSpec((C, Ci), lambda i, j: (0, 0)),
            pl.BlockSpec((C, 1), lambda i, j: (0, 0)),
        ],
        out_specs=act_spec,
        compiler_params=pltpu.CompilerParams(
            dimension_semantics=("parallel", "parallel"),
            vmem_limit_bytes=32 * 1024 * 1024,
        ),
    )(x_flat, slab, params["wg"].astype(jnp.float32), ww, wb)
    return out.reshape(B, C, T, H, W)


# ----------------------------------------------------------------------------
# Deterministic parameter init (shapes from the module's __init__).
# NOTE: PyTorch inits the BN gamma/beta of self.W to zero (W_y == 0 at init);
#       synthetic nonzero values are used here so the self-test exercises the path.
# ----------------------------------------------------------------------------
def init_params(key, C=4):
    Ci = max(C // 2, 1)
    ks = jax.random.split(key, 8)

    def n(k, shape, scale=0.25):
        return (scale * jax.random.normal(k, shape)).astype(jnp.float32)

    return dict(
        wg=n(ks[0], (Ci, C)), bg=n(ks[1], (Ci,)),          # g: 1x1 conv (bias=True)
        w1=n(ks[2], (C, Ci)), b1=n(ks[3], (C,)),           # W[0]: 1x1 conv (bias=True)
        gamma=n(ks[4], (C,)) + 1.0, beta=n(ks[5], (C,)),   # W[1]: BatchNorm affine
        mean=n(ks[6], (C,)), var=jnp.abs(n(ks[7], (C,))) + 1.0,
    )


# ----------------------------------------------------------------------------
# Pure-JAX reference (correctness check for the Pallas path).
# ----------------------------------------------------------------------------
def _maxpool_hw(v):
    B, c, T, H, W = v.shape
    return jnp.max(v.reshape(B, c, T, H // 2, 2, W // 2, 2), axis=(4, 6))


def _reference_forward(x, p):
    B, C, T, H, W = x.shape
    Ci = p["wg"].shape[0]
    N = T * H * W
    Ns = T * (H // 2) * (W // 2)
    gconv = jnp.einsum("oc,bcthw->bothw", p["wg"], x) + p["bg"][None, :, None, None, None]
    g_x = _maxpool_hw(gconv).reshape(B, Ci, Ns).transpose(0, 2, 1)      # (B, Ns, Ci)
    theta = x.reshape(B, C, N).transpose(0, 2, 1)                       # (B, N, C)
    phi = _maxpool_hw(x).reshape(B, C, Ns)                              # (B, C, Ns)
    f = jnp.einsum("bnc,bcs->bns", theta, phi)
    fdc = jax.nn.softmax(f, axis=-1)
    y = jnp.einsum("bns,bsi->bni", fdc, g_x)                            # (B, N, Ci)
    yt = y.transpose(0, 2, 1).reshape(B, Ci, T, H, W)
    wy = jnp.einsum("oi,bithw->bothw", p["w1"], yt) + p["b1"][None, :, None, None, None]
    s = p["gamma"] / jnp.sqrt(p["var"] + 1e-5)
    wy = wy * s[None, :, None, None, None] + (p["beta"] - p["mean"] * s)[None, :, None, None, None]
    return wy + x


if __name__ == "__main__":
    key = jax.random.PRNGKey(0)
    kx, kp = jax.random.split(key)
    B, C, T, H, W = 2, 4, 2, 8, 8          # (b, c, t, h, w); N = T*H*W = 128 lanes
    x = jax.random.normal(kx, (B, C, T, H, W), dtype=jnp.float32)
    params = init_params(kp, C=C)

    out = jax.block_until_ready(nonlocal_block_forward(x, params))
    ref = jax.block_until_ready(_reference_forward(x, params))

    err = float(jnp.max(jnp.abs(out - ref)))
    if out.shape != (B, C, T, H, W) or not np.isfinite(err) or err > 5e-3:
        raise AssertionError(f"Pallas output mismatch vs reference: max|diff|={err}")
    print("KERNEL_OK")
</pallas_src>

<mosaic_0001>
module attributes {stable_mosaic.version = 11 : i64} {
  func.func @_nonlocal_kernel(%arg0: i32, %arg1: i32, %arg2: memref<2x4x128xf32, #tpu.memory_space<vmem>>, %arg3: memref<2x4x128xf32, #tpu.memory_space<vmem>>, %arg4: memref<2x4xf32, #tpu.memory_space<vmem>>, %arg5: memref<4x2xf32, #tpu.memory_space<vmem>>, %arg6: memref<4x1xf32, #tpu.memory_space<vmem>>, %arg7: memref<2x4x128xf32, #tpu.memory_space<vmem>>) attributes {dimension_semantics = [#tpu.dimension_semantics<parallel>, #tpu.dimension_semantics<parallel>], iteration_bounds = array<i64: 1, 1>, scalar_prefetch = 0 : i64, scratch_operands = 0 : i64, tpu.core_type = #tpu.core_type<tc>, window_params = [{transform_indices = @transform_0, window_bounds = array<i64: 2, 4, 128>}, {transform_indices = @transform_1, window_bounds = array<i64: 2, 4, 128>}, {pipeline_mode = #tpu.pipeline_mode<synchronous>, transform_indices = @transform_2, window_bounds = array<i64: 2, 4>}, {pipeline_mode = #tpu.pipeline_mode<synchronous>, transform_indices = @transform_3, window_bounds = array<i64: 4, 2>}, {pipeline_mode = #tpu.pipeline_mode<synchronous>, transform_indices = @transform_4, window_bounds = array<i64: 4, 1>}, {transform_indices = @transform_5, window_bounds = array<i64: 2, 4, 128>}]} {
    %c0 = arith.constant 0 : index
    %c0_0 = arith.constant 0 : index
    %0 = vector.load %arg4[%c0, %c0_0] : memref<2x4xf32, #tpu.memory_space<vmem>>, vector<2x4xf32>
    %c0_1 = arith.constant 0 : index
    %c0_2 = arith.constant 0 : index
    %1 = vector.load %arg5[%c0_1, %c0_2] : memref<4x2xf32, #tpu.memory_space<vmem>>, vector<4x2xf32>
    %c0_3 = arith.constant 0 : index
    %c0_4 = arith.constant 0 : index
    %2 = vector.load %arg6[%c0_3, %c0_4] : memref<4x1xf32, #tpu.memory_space<vmem>>, vector<4x1xf32>
    %3 = vector.shape_cast %2 : vector<4x1xf32> to vector<4x1xf32>
    %4 = vector.broadcast %3 : vector<4x1xf32> to vector<4x128xf32>
    %c0_5 = arith.constant 0 : index
    %c0_6 = arith.constant 0 : index
    %c0_7 = arith.constant 0 : index
    %5 = vector.load %arg3[%c0_5, %c0_6, %c0_7] : memref<2x4x128xf32, #tpu.memory_space<vmem>>, vector<1x4x128xf32>
    %6 = vector.shape_cast %5 : vector<1x4x128xf32> to vector<4x128xf32>
    %c0_8 = arith.constant 0 : index
    %c0_9 = arith.constant 0 : index
    %c0_10 = arith.constant 0 : index
    %7 = vector.load %arg2[%c0_8, %c0_9, %c0_10] : memref<2x4x128xf32, #tpu.memory_space<vmem>>, vector<1x4x128xf32>
    %8 = vector.shape_cast %7 : vector<1x4x128xf32> to vector<4x128xf32>
    %cst = arith.constant dense<0.000000e+00> : vector<2x128xf32>
    %9 = tpu.matmul %0, %6, %cst {dimension_numbers = #tpu.dot_dimension_numbers<[1], [0], [0], [1], [0, 0, 1, 1], [], []>} : vector<2x4xf32>, vector<4x128xf32>, vector<2x128xf32> -> vector<2x128xf32>
    %10 = vector.extract_strided_slice %9 {offsets = [0, 0], sizes = [2, 32], strides = [1, 1]} : vector<2x128xf32> to vector<2x32xf32>
    %11 = vector.extract_strided_slice %9 {offsets = [0, 32], sizes = [2, 32], strides = [1, 1]} : vector<2x128xf32> to vector<2x32xf32>
    %12 = arith.maximumf %10, %11 : vector<2x32xf32>
    %13 = vector.extract_strided_slice %9 {offsets = [0, 64], sizes = [2, 32], strides = [1, 1]} : vector<2x128xf32> to vector<2x32xf32>
    %14 = vector.extract_strided_slice %9 {offsets = [0, 96], sizes = [2, 32], strides = [1, 1]} : vector<2x128xf32> to vector<2x32xf32>
    %15 = arith.maximumf %13, %14 : vector<2x32xf32>
    %16 = arith.maximumf %12, %15 : vector<2x32xf32>
    %17 = vector.extract_strided_slice %6 {offsets = [0, 0], sizes = [4, 32], strides = [1, 1]} : vector<4x128xf32> to vector<4x32xf32>
    %18 = vector.extract_strided_slice %6 {offsets = [0, 32], sizes = [4, 32], strides = [1, 1]} : vector<4x128xf32> to vector<4x32xf32>
    %19 = arith.maximumf %17, %18 : vector<4x32xf32>
    %20 = vector.extract_strided_slice %6 {offsets = [0, 64], sizes = [4, 32], strides = [1, 1]} : vector<4x128xf32> to vector<4x32xf32>
    %21 = vector.extract_strided_slice %6 {offsets = [0, 96], sizes = [4, 32], strides = [1, 1]} : vector<4x128xf32> to vector<4x32xf32>
    %22 = arith.maximumf %20, %21 : vector<4x32xf32>
    %23 = arith.maximumf %19, %22 : vector<4x32xf32>
    %cst_11 = arith.constant dense<0.000000e+00> : vector<128x32xf32>
    %24 = tpu.matmul %8, %23, %cst_11 {dimension_numbers = #tpu.dot_dimension_numbers<[0], [0], [1], [1], [0, 1, 1, 1], [], []>} : vector<4x128xf32>, vector<4x32xf32>, vector<128x32xf32> -> vector<128x32xf32>
    %cst_12 = arith.constant dense<0xFF800000> : vector<128xf32>
    %25 = vector.multi_reduction <maximumf>, %24, %cst_12 [1] : vector<128x32xf32> to vector<128xf32>
    %26 = vector.shape_cast %25 : vector<128xf32> to vector<128x1xf32>
    %27 = vector.broadcast %26 : vector<128x1xf32> to vector<128x32xf32>
    %28 = arith.subf %24, %27 : vector<128x32xf32>
    %29 = math.exp %28 : vector<128x32xf32>
    %cst_13 = arith.constant dense<0.000000e+00> : vector<128xf32>
    %30 = vector.multi_reduction <add>, %29, %cst_13 [1] : vector<128x32xf32> to vector<128xf32>
    %31 = vector.shape_cast %30 : vector<128xf32> to vector<128x1xf32>
    %32 = vector.broadcast %31 : vector<128x1xf32> to vector<128x32xf32>
    %33 = arith.divf %29, %32 : vector<128x32xf32>
    %cst_14 = arith.constant dense<0.000000e+00> : vector<4x32xf32>
    %34 = tpu.matmul %1, %16, %cst_14 {dimension_numbers = #tpu.dot_dimension_numbers<[1], [0], [0], [1], [0, 0, 1, 1], [], []>} : vector<4x2xf32>, vector<2x32xf32>, vector<4x32xf32> -> vector<4x32xf32>
    %cst_15 = arith.constant dense<0.000000e+00> : vector<4x128xf32>
    %35 = tpu.matmul %34, %33, %cst_15 {dimension_numbers = #tpu.dot_dimension_numbers<[1], [1], [0], [0], [0, 0, 1, 0], [], []>} : vector<4x32xf32>, vector<128x32xf32>, vector<4x128xf32> -> vector<4x128xf32>
    %36 = arith.addf %35, %4 : vector<4x128xf32>
    %37 = arith.addf %36, %8 : vector<4x128xf32>
    %c0_16 = arith.constant 0 : index
    %c0_17 = arith.constant 0 : index
    %c0_18 = arith.constant 0 : index
    %38 = vector.load %arg7[%c0_16, %c0_17, %c0_18] : memref<2x4x128xf32, #tpu.memory_space<vmem>>, vector<1x4x128xf32>
    %39 = vector.shape_cast %38 : vector<1x4x128xf32> to vector<4x128xf32>
    %40 = vector.shape_cast %37 : vector<4x128xf32> to vector<1x4x128xf32>
    tpu.vector_store %arg7[%c0_16, %c0_17, %c0_18], %40 {strides = array<i32>} : memref<2x4x128xf32, #tpu.memory_space<vmem>>, vector<1x4x128xf32>,
    %c1 = arith.constant 1 : index
    %c0_19 = arith.constant 0 : index
    %c0_20 = arith.constant 0 : index
    %41 = vector.load %arg3[%c1, %c0_19, %c0_20] : memref<2x4x128xf32, #tpu.memory_space<vmem>>, vector<1x4x128xf32>
    %42 = vector.shape_cast %41 : vector<1x4x128xf32> to vector<4x128xf32>
    %c1_21 = arith.constant 1 : index
    %c0_22 = arith.constant 0 : index
    %c0_23 = arith.constant 0 : index
    %43 = vector.load %arg2[%c1_21, %c0_22, %c0_23] : memref<2x4x128xf32, #tpu.memory_space<vmem>>, vector<1x4x128xf32>
    %44 = vector.shape_cast %43 : vector<1x4x128xf32> to vector<4x128xf32>
    %cst_24 = arith.constant dense<0.000000e+00> : vector<2x128xf32>
    %45 = tpu.matmul %0, %42, %cst_24 {dimension_numbers = #tpu.dot_dimension_numbers<[1], [0], [0], [1], [0, 0, 1, 1], [], []>} : vector<2x4xf32>, vector<4x128xf32>, vector<2x128xf32> -> vector<2x128xf32>
    %46 = vector.extract_strided_slice %45 {offsets = [0, 0], sizes = [2, 32], strides = [1, 1]} : vector<2x128xf32> to vector<2x32xf32>
    %47 = vector.extract_strided_slice %45 {offsets = [0, 32], sizes = [2, 32], strides = [1, 1]} : vector<2x128xf32> to vector<2x32xf32>
    %48 = arith.maximumf %46, %47 : vector<2x32xf32>
    %49 = vector.extract_strided_slice %45 {offsets = [0, 64], sizes = [2, 32], strides = [1, 1]} : vector<2x128xf32> to vector<2x32xf32>
    %50 = vector.extract_strided_slice %45 {offsets = [0, 96], sizes = [2, 32], strides = [1, 1]} : vector<2x128xf32> to vector<2x32xf32>
    %51 = arith.maximumf %49, %50 : vector<2x32xf32>
    %52 = arith.maximumf %48, %51 : vector<2x32xf32>
    %53 = vector.extract_strided_slice %42 {offsets = [0, 0], sizes = [4, 32], strides = [1, 1]} : vector<4x128xf32> to vector<4x32xf32>
    %54 = vector.extract_strided_slice %42 {offsets = [0, 32], sizes = [4, 32], strides = [1, 1]} : vector<4x128xf32> to vector<4x32xf32>
    %55 = arith.maximumf %53, %54 : vector<4x32xf32>
    %56 = vector.extract_strided_slice %42 {offsets = [0, 64], sizes = [4, 32], strides = [1, 1]} : vector<4x128xf32> to vector<4x32xf32>
    %57 = vector.extract_strided_slice %42 {offsets = [0, 96], sizes = [4, 32], strides = [1, 1]} : vector<4x128xf32> to vector<4x32xf32>
    %58 = arith.maximumf %56, %57 : vector<4x32xf32>
    %59 = arith.maximumf %55, %58 : vector<4x32xf32>
    %cst_25 = arith.constant dense<0.000000e+00> : vector<128x32xf32>
    %60 = tpu.matmul %44, %59, %cst_25 {dimension_numbers = #tpu.dot_dimension_numbers<[0], [0], [1], [1], [0, 1, 1, 1], [], []>} : vector<4x128xf32>, vector<4x32xf32>, vector<128x32xf32> -> vector<128x32xf32>
    %cst_26 = arith.constant dense<0xFF800000> : vector<128xf32>
    %61 = vector.multi_reduction <maximumf>, %60, %cst_26 [1] : vector<128x32xf32> to vector<128xf32>
    %62 = vector.shape_cast %61 : vector<128xf32> to vector<128x1xf32>
    %63 = vector.broadcast %62 : vector<128x1xf32> to vector<128x32xf32>
    %64 = arith.subf %60, %63 : vector<128x32xf32>
    %65 = math.exp %64 : vector<128x32xf32>
    %cst_27 = arith.constant dense<0.000000e+00> : vector<128xf32>
    %66 = vector.multi_reduction <add>, %65, %cst_27 [1] : vector<128x32xf32> to vector<128xf32>
    %67 = vector.shape_cast %66 : vector<128xf32> to vector<128x1xf32>
    %68 = vector.broadcast %67 : vector<128x1xf32> to vector<128x32xf32>
    %69 = arith.divf %65, %68 : vector<128x32xf32>
    %cst_28 = arith.constant dense<0.000000e+00> : vector<4x32xf32>
    %70 = tpu.matmul %1, %52, %cst_28 {dimension_numbers = #tpu.dot_dimension_numbers<[1], [0], [0], [1], [0, 0, 1, 1], [], []>} : vector<4x2xf32>, vector<2x32xf32>, vector<4x32xf32> -> vector<4x32xf32>
    %cst_29 = arith.constant dense<0.000000e+00> : vector<4x128xf32>
    %71 = tpu.matmul %70, %69, %cst_29 {dimension_numbers = #tpu.dot_dimension_numbers<[1], [1], [0], [0], [0, 0, 1, 0], [], []>} : vector<4x32xf32>, vector<128x32xf32>, vector<4x128xf32> -> vector<4x128xf32>
    %72 = arith.addf %71, %4 : vector<4x128xf32>
    %73 = arith.addf %72, %44 : vector<4x128xf32>
    %c1_30 = arith.constant 1 : index
    %c0_31 = arith.constant 0 : index
    %c0_32 = arith.constant 0 : index
    %74 = vector.load %arg7[%c1_30, %c0_31, %c0_32] : memref<2x4x128xf32, #tpu.memory_space<vmem>>, vector<1x4x128xf32>
    %75 = vector.shape_cast %74 : vector<1x4x128xf32> to vector<4x128xf32>
    %76 = vector.shape_cast %73 : vector<4x128xf32> to vector<1x4x128xf32>
    tpu.vector_store %arg7[%c1_30, %c0_31, %c0_32], %76 {strides = array<i32>} : memref<2x4x128xf32, #tpu.memory_space<vmem>>, vector<1x4x128xf32>,
    return
  }
  func.func @transform_0(%arg0: i32, %arg1: i32) -> (i32, i32, i32) {
    %c0_i32 = arith.constant 0 : i32
    %c0_i32_0 = arith.constant 0 : i32
    return %arg0, %c0_i32, %arg1 : i32, i32, i32
  }
  func.func @transform_1(%arg0: i32, %arg1: i32) -> (i32, i32, i32) {
    %c0_i32 = arith.constant 0 : i32
    %c0_i32_0 = arith.constant 0 : i32
    %c0_i32_1 = arith.constant 0 : i32
    return %arg0, %c0_i32, %c0_i32_0 : i32, i32, i32
  }
  func.func @transform_2(%arg0: i32, %arg1: i32) -> (i32, i32) {
    %c0_i32 = arith.constant 0 : i32
    %c0_i32_0 = arith.constant 0 : i32
    %c0_i32_1 = arith.constant 0 : i32
    return %c0_i32, %c0_i32_0 : i32, i32
  }
  func.func @transform_3(%arg0: i32, %arg1: i32) -> (i32, i32) {
    %c0_i32 = arith.constant 0 : i32
    %c0_i32_0 = arith.constant 0 : i32
    %c0_i32_1 = arith.constant 0 : i32
    return %c0_i32, %c0_i32_0 : i32, i32
  }
  func.func @transform_4(%arg0: i32, %arg1: i32) -> (i32, i32) {
    %c0_i32 = arith.constant 0 : i32
    %c0_i32_0 = arith.constant 0 : i32
    %c0_i32_1 = arith.constant 0 : i32
    return %c0_i32, %c0_i32_0 : i32, i32
  }
  func.func @transform_5(%arg0: i32, %arg1: i32) -> (i32, i32, i32) {
    %c0_i32 = arith.constant 0 : i32
    %c0_i32_0 = arith.constant 0 : i32
    return %arg0, %c0_i32, %arg1 : i32, i32, i32
  }
}

</mosaic_0001>

<bundles_post_ra>
// kernel: tpu_custom_call.1
= control target key start
LH: loop header
LB: loop body
LE: loop exit
PB: predicated region body
PF: predicated region fallthrough
CT: control target
= control target key end

     0   :  { %10 = vsyncpa [#allocation3], 0  ;;  %s2498_s0 = inlined_call_operand.vmem [shape: f32[2,4,128], index: 0, kind: input, shape index: {}]   ;;  %s2499_s1 = inlined_call_operand.hbm [shape: f32[2,4,128], index: 1, kind: input, shape index: {}]   ;;  %s2500_s2 = inlined_call_operand.vmem [shape: f32[2,4], index: 2, kind: input, shape index: {}]   ;;  %s2501_s3 = inlined_call_operand.vmem [shape: f32[4,2], index: 3, kind: input, shape index: {}]   ;;  %s2502_s4 = inlined_call_operand.vmem [shape: f32[4,1], index: 4, kind: input, shape index: {}]   ;;  %s2503_s5 = inlined_call_operand.hbm [shape: f32[2,4,128], index: 5, kind: output, shape index: {}]  }
   0x1   :  { %11 = vsyncpa [#allocation4], 0  ;;  %s1941_s18 = smov [#allocation2]  }
   0x2   :  { %s19_s19 = sshll.u32 %s1941_s18, 4  ;;  %s20_s19 = int_to_ptr.vmem [resolvable:$true] %s19_s19 }
   0x3   :  { %s1905_s20 = scalar_lea.vmem %s20_s19, 128  ;;  %p1910_p1 = scmp.lt.s32.totalorder %s20_s19, %s20_s19 }
   0x4   :  { %p1906_p0 = scmp.ne.s32.totalorder %s20_s19, %s1905_s20  ;;  %p1911_p2 = scmp.lt.s32.totalorder %s1905_s20, %s1905_s20 }
   0x6   :  { %p1912_p3 = por %p1911_p2, %p1910_p1 }
   0x8   :  { %p1913_p4 = pnand %p1912_p3, %p1906_p0 }
   0xa   :  { %1916 = shalt.err (!%p1913_p4)
}
   0xb   :  { %s1942_s21 = smov 64   ;;  %s1943_s22 = smov 4  }
   0xc   :  { %25 = dma.hbm_to_vmem [thread:$0]  %s2499_s1, 128, %s20_s19, [#allocation3], %s1942_s21, %s1942_s21, %s1943_s22  }
   0xd   :  { %1937 = dma.done.wait [#allocation3], 128  }
   0xe   :  { %1938 = vsyncadd [#allocation3], 4294967168  ;;  %v1944_v0 = vmov 0.0   ;;  %vm1945_vm0 = vmmov 0   ;;  %vm49_vm1 = vcmask 1043456   ;;  %vm45_vm2 = vcmask 31744  }
   0xf   :  { %1615 = vmatprep.subr.mxu1 %v1944_v0  ;;  %1617 = vmatprep.mubr.msk.f32.mxu1 %vm1945_vm0, %v1944_v0  ;;  %v43_v1 = vld [vmem:[#allocation2] sm:$0xf]  ;;  %s1946_s28 = smov 96   ;;  %v2004_v6 = vld [vmem:[#allocation2 + $0x4] sm:$0xf]  ;;  %vm551_vm3 = vcmask 1041408  }
  0x10   :  { %1646 = vmatprep.subr.mxu0 %v1944_v0  ;;  %1648 = vmatprep.mubr.msk.f32.mxu0 %vm1945_vm0, %v1944_v0  ;;  %v1994_v2 = vld [vmem:[%s2500_s2] sm:$0x3]  ;;  %v1500_v31 = vld [vmem:[%s2498_s0 + $0x4] sm:$0xf]  ;;  %vm547_vm4 = vcmask 15360   ;;  %vm370_vm5 = vcmask 261120  }
  0x11   :  { %v44_v3 = vld [vmem:[%s2498_s0] sm:$0xf]  ;;  %133 = vrot.lane.b32.xlu0 %v43_v1, %s1946_s28  ;;  %1616 = vmatpush3.msk.msra.mxu1 %vm49_vm1, %v43_v1  ;;  %s1948_s9 = smov [#allocation5]  }
  0x12   :  { %1618 = vmatmul.mubr.msk.f32.vlgmr.msra.gmra.mxu1 %vm45_vm2, %v1994_v2  ;;  %142 = vxpose.xlu1.b32.start.end [1/1] (short) %v44_v3, 128  ;;  %v2039_v34 = vld [vmem:[%s2501_s3] sm:$0xf]  ;;  %s1450_s10 = sshll.u32 %s1948_s9, 4  ;;  %s1451_s10 = int_to_ptr.vmem [resolvable:$true] %s1450_s10 }
  0x13   :  { %s1917_s13 = scalar_lea.vmem %s1451_s10, 128  ;;  %p1922_p6 = scmp.lt.s32.totalorder %s1451_s10, %s1451_s10 }
  0x14   :  { %p1918_p5 = scmp.ne.s32.totalorder %s1451_s10, %s1917_s13  ;;  %p1923_p7 = scmp.lt.s32.totalorder %s1917_s13, %s1917_s13 }
  0x16   :  { %p1924_p8 = por %p1923_p7, %p1922_p6 }
  0x18   :  { %p1925_p9 = pnand %p1924_p8, %p1918_p5 }
  0x83   :  { %v134_v4 = vpop.permute.xlu0 %133 }
  0x84   :  { %v136_v5 = vmax.f32 %v43_v1, %v134_v4 }
  0x86   :  { %138 = vrot.lane.b32.xlu0 %v136_v5, %s1942_s21 }
  0x8a   :  { %835 = vrot.lane.b32.xlu0 %v2004_v6, %s1946_s28 }
  0x8e   :  { %v158_v7 = vpop.trf.xlu1 }
  0x8f   :  { %1622 = vmatprep.mubr.msk.f32.mxu1 %vm45_vm2, %v158_v7 }
  0x92   :  { %v159_v8 = vpop.trf.xlu1 }
  0x96   :  { %v160_v9 = vpop.trf.xlu1 }
  0x9a   :  { %v161_v10 = vpop.trf.xlu1 }
  0x9e   :  { %v162_v12 = vpop.trf.xlu1 }
  0xa2   :  { %v163_v14 = vpop.trf.xlu1 }
  0xa6   :  { %v164_v15 = vpop.trf.xlu1 }
  0xaa   :  { %v165_v16 = vpop.trf.xlu1 }
  0xae   :  { %v166_v17 = vpop.trf.xlu1 }
  0xb2   :  { %v167_v18 = vpop.trf.xlu1 }
  0xb6   :  { %v168_v20 = vpop.trf.xlu1 }
  0xba   :  { %v169_v22 = vpop.trf.xlu1 }
  0xbe   :  { %v170_v23 = vpop.trf.xlu1 }
  0xc2   :  { %v171_v24 = vpop.trf.xlu1 }
  0xc6   :  { %v172_v25 = vpop.trf.xlu1 }
  0xca   :  { %v173_v26 = vpop.trf.xlu1 }
  0xd2   :  { %v119_v11 = vpop.f32.mrf.mxu1 }
  0xd3   :  { %124 = vrot.lane.b32.xlu1 %v119_v11, %s1946_s28 }
  0xd4   :  { %v1619_v13 = vpop.f32.mrf.mxu1 }
  0xf8   :  { %v139_v19 = vpop.permute.xlu0 %138 }
  0xf9   :  { %v141_v21 = vmax.f32 %v136_v5, %v139_v19 }
  0xfb   :  { %1620 = vmatprep.subr.msk.mxu1 %vm49_vm1, %v141_v21 }
  0xfc   :  { %1621 = vmatpush3.msk.msra.mxu1 %vm49_vm1, %v141_v21  ;;  %v836_v28 = vpop.permute.xlu0 %835 }
  0xfd   :  { %1623 = vmatmul.mubr.msk.f32.vlgmr.msra.gmra.mxu1 %vm45_vm2, %v159_v8  ;;  %1651 = vmatprep.subr.mxu1 %v1944_v0  ;;  %v838_v30 = vmax.f32 %v2004_v6, %v836_v28 }
  0xfe   :  { %1625 = vmatprep.mubr.msk.f32.mxu1 %vm45_vm2, %v160_v9 }
 0x101   :  { %1626 = vmatmul.mubr.msk.f32.gmra.mxu1 %vm45_vm2, %v161_v10 }
 0x102   :  { %1628 = vmatprep.mubr.msk.f32.mxu1 %vm45_vm2, %v162_v12 }
 0x105   :  { %1629 = vmatmul.mubr.msk.f32.gmra.mxu1 %vm45_vm2, %v163_v14 }
 0x106   :  { %1631 = vmatprep.mubr.msk.f32.mxu1 %vm45_vm2, %v164_v15 }
 0x109   :  { %1632 = vmatmul.mubr.msk.f32.gmra.mxu1 %vm45_vm2, %v165_v16 }
 0x10a   :  { %1634 = vmatprep.mubr.msk.f32.mxu1 %vm45_vm2, %v166_v17 }
 0x10d   :  { %1635 = vmatmul.mubr.msk.f32.gmra.mxu1 %vm45_vm2, %v167_v18 }
 0x10e   :  { %1637 = vmatprep.mubr.msk.f32.mxu1 %vm45_vm2, %v168_v20 }
 0x111   :  { %1638 = vmatmul.mubr.msk.f32.gmra.mxu1 %vm45_vm2, %v169_v22 }
 0x112   :  { %1640 = vmatprep.mubr.msk.f32.mxu1 %vm45_vm2, %v170_v23 }
 0x115   :  { %1641 = vmatmul.mubr.msk.f32.gmra.mxu1 %vm45_vm2, %v171_v24 }
 0x116   :  { %1643 = vmatprep.mubr.msk.f32.mxu1 %vm45_vm2, %v172_v25 }
 0x119   :  { %1644 = vmatmul.mubr.msk.f32.gmra.mxu1 %vm45_vm2, %v173_v26 }
 0x11a   :  { %1683 = vmatprep.mubr.msk.f32.mxu1 %vm1945_vm0, %v1944_v0 }
 0x145   :  { %v125_v27 = vpop.permute.xlu1 %124 }
 0x146   :  { %v127_v29 = vmax.f32 %v119_v11, %v125_v27 }
 0x148   :  { %129 = vrot.lane.b32.xlu0 %v127_v29, %s1942_s21 }
 0x14c   :  { %840 = vrot.lane.b32.xlu0 %v838_v30, %s1942_s21 }
 0x16a   :  { %844 = vxpose.xlu0.b32.start.end [1/1] (short) %v1500_v31, 128 }
 0x1ba   :  { %v130_v32 = vpop.permute.xlu0 %129 }
 0x1bb   :  { %v132_v33 = vmax.f32 %v127_v29, %v130_v32 }
 0x1bd   :  { %v2041_v35 = vpop.f32.mrf.mxu1  ;;  %1647 = vmatpush3.msk.msra.mxu0 %vm551_vm3, %v132_v33 }
 0x1be   :  { %1649 = vmatmul.mubr.msk.f32.vlgmr.msra.gmra.mxu0 %vm547_vm4, %v2039_v34  ;;  %v841_v36 = vpop.permute.xlu0 %840  ;;  %1686 = vmatprep.subr.mxu0 %v1944_v0  ;;  %v374_v13 = vsel %vm370_vm5, %v2041_v35, -inf }
 0x1bf   :  { %v843_v37 = vmax.f32 %v838_v30, %v841_v36  ;;  %v2047_v38 = vpop.f32.mrf.mxu1  ;;  %1687 = vmatpush3.msk.msra.mxu0 %vm49_vm1, %v2004_v6  ;;  %1688 = vmatprep.mubr.msk.f32.mxu0 %vm1945_vm0, %v1944_v0 }
 0x1c0   :  { %v371_v63 = vsel %vm370_vm5, %v2047_v38, -inf }
 0x1c1   :  { %v2053_v39 = vpop.f32.mrf.mxu1  ;;  %1691 = vmatprep.subr.msk.mxu0 %vm49_vm1, %v843_v37 }
 0x1c2   :  { %1689 = vmatmul.mubr.msk.f32.vlgmr.msra.gmra.mxu0 %vm45_vm2, %v1994_v2  ;;  %v380_v11 = vsel %vm370_vm5, %v2053_v39, -inf }
 0x1c3   :  { %1692 = vmatpush3.msk.msra.mxu0 %vm49_vm1, %v843_v37  ;;  %v2059_v40 = vpop.f32.mrf.mxu1 }
 0x1c4   :  { %1722 = vmatprep.subr.mxu0 %v1944_v0  ;;  %v377_v60 = vsel %vm370_vm5, %v2059_v40, -inf }
 0x1c5   :  { %v2062_v41 = vpop.f32.mrf.mxu1 }
 0x1c6   :  { %v386_v9 = vsel %vm370_vm5, %v2062_v41, -inf }
 0x1c7   :  { %v2064_v42 = vpop.f32.mrf.mxu1 }
 0x1c8   :  { %v383_v57 = vsel %vm370_vm5, %v2064_v42, -inf }
 0x1c9   :  { %v2066_v43 = vpop.f32.mrf.mxu1 }
 0x1ca   :  { %v392_v7 = vsel %vm370_vm5, %v2066_v43, -inf }
 0x1cb   :  { %v2068_v44 = vpop.f32.mrf.mxu1 }
 0x1cc   :  { %v389_v55 = vsel %vm370_vm5, %v2068_v44, -inf }
 0x1cd   :  { %v2070_v45 = vpop.f32.mrf.mxu1 }
 0x1ce   :  { %v398_v3 = vsel %vm370_vm5, %v2070_v45, -inf }
 0x1cf   :  { %v2072_v46 = vpop.f32.mrf.mxu1 }
 0x1d0   :  { %v395_v5 = vsel %vm370_vm5, %v2072_v46, -inf }
 0x1d1   :  { %v2074_v47 = vpop.f32.mrf.mxu1 }
 0x1d2   :  { %v404_v61 = vsel %vm370_vm5, %v2074_v47, -inf }
 0x1d3   :  { %v2076_v48 = vpop.f32.mrf.mxu1 }
 0x1d4   :  { %v401_v1 = vsel %vm370_vm5, %v2076_v48, -inf }
 0x1d5   :  { %v2078_v49 = vpop.f32.mrf.mxu1 }
 0x1d6   :  { %v410_v56 = vsel %vm370_vm5, %v2078_v49, -inf }
 0x1d7   :  { %v2080_v50 = vpop.f32.mrf.mxu1 }
 0x1d8   :  { %v407_v58 = vsel %vm370_vm5, %v2080_v50, -inf }
 0x1d9   :  { %v2082_v51 = vpop.f32.mrf.mxu1 }
 0x1da   :  { %v416_v52 = vsel %vm370_vm5, %v2082_v51, -inf }
 0x1db   :  { %417 = vmax.xlane.f32.xlu0 %v416_v52  ;;  %v2086_v53 = vpop.f32.mrf.mxu1 }
 0x1dc   :  { %v413_v54 = vsel %vm370_vm5, %v2086_v53, -inf }
 0x1dd   :  { %414 = vmax.xlane.f32.xlu1 %v413_v54 }
 0x1df   :  { %390 = vmax.xlane.f32.xlu0 %v389_v55 }
 0x1e1   :  { %411 = vmax.xlane.f32.xlu1 %v410_v56 }
 0x1e3   :  { %384 = vmax.xlane.f32.xlu0 %v383_v57 }
 0x1e5   :  { %408 = vmax.xlane.f32.xlu1 %v407_v58 }
 0x1e6   :  { %v860_v59 = vpop.trf.xlu0 }
 0x1e7   :  { %378 = vmax.xlane.f32.xlu0 %v377_v60  ;;  %1693 = vmatprep.mubr.msk.f32.mxu0 %vm45_vm2, %v860_v59 }
 0x1e9   :  { %405 = vmax.xlane.f32.xlu1 %v404_v61 }
 0x1ea   :  { %v861_v62 = vpop.trf.xlu0 }
 0x1eb   :  { %372 = vmax.xlane.f32.xlu0 %v371_v63  ;;  %1694 = vmatmul.mubr.msk.f32.vlgmr.msra.gmra.mxu0 %vm45_vm2, %v861_v62 }
 0x1ed   :  { %402 = vmax.xlane.f32.xlu1 %v401_v1 }
 0x1ee   :  { %v862_v2 = vpop.trf.xlu0 }
 0x1ef   :  { %1696 = vmatprep.mubr.msk.f32.mxu0 %vm45_vm2, %v862_v2 }
 0x1f1   :  { %399 = vmax.xlane.f32.xlu1 %v398_v3 }
 0x1f2   :  { %v863_v4 = vpop.trf.xlu0 }
 0x1f3   :  { %1697 = vmatmul.mubr.msk.f32.gmra.mxu0 %vm45_vm2, %v863_v4 }
 0x1f5   :  { %396 = vmax.xlane.f32.xlu1 %v395_v5 }
 0x1f6   :  { %v864_v6 = vpop.trf.xlu0 }
 0x1f7   :  { %1699 = vmatprep.mubr.msk.f32.mxu0 %vm45_vm2, %v864_v6 }
 0x1f9   :  { %393 = vmax.xlane.f32.xlu1 %v392_v7 }
 0x1fa   :  { %v865_v8 = vpop.trf.xlu0 }
 0x1fb   :  { %1700 = vmatmul.mubr.msk.f32.gmra.mxu0 %vm45_vm2, %v865_v8 }
 0x1fd   :  { %387 = vmax.xlane.f32.xlu1 %v386_v9 }
 0x1fe   :  { %v866_v10 = vpop.trf.xlu0 }
 0x1ff   :  { %1702 = vmatprep.mubr.msk.f32.mxu0 %vm45_vm2, %v866_v10 }
 0x201   :  { %381 = vmax.xlane.f32.xlu1 %v380_v11 }
 0x202   :  { %v867_v12 = vpop.trf.xlu0 }
 0x203   :  { %1703 = vmatmul.mubr.msk.f32.gmra.mxu0 %vm45_vm2, %v867_v12 }
 0x205   :  { %375 = vmax.xlane.f32.xlu1 %v374_v13 }
 0x206   :  { %v868_v14 = vpop.trf.xlu0 }
 0x207   :  { %1705 = vmatprep.mubr.msk.f32.mxu0 %vm45_vm2, %v868_v14 }
 0x20a   :  { %v869_v15 = vpop.trf.xlu0 }
 0x20b   :  { %1706 = vmatmul.mubr.msk.f32.gmra.mxu0 %vm45_vm2, %v869_v15 }
 0x20e   :  { %v870_v16 = vpop.trf.xlu0 }
 0x20f   :  { %1708 = vmatprep.mubr.msk.f32.mxu0 %vm45_vm2, %v870_v16 }
 0x212   :  { %v871_v17 = vpop.trf.xlu0 }
 0x213   :  { %1709 = vmatmul.mubr.msk.f32.gmra.mxu0 %vm45_vm2, %v871_v17 }
 0x216   :  { %v872_v18 = vpop.trf.xlu0 }
 0x217   :  { %1711 = vmatprep.mubr.msk.f32.mxu0 %vm45_vm2, %v872_v18 }
 0x21a   :  { %v873_v19 = vpop.trf.xlu0 }
 0x21b   :  { %1712 = vmatmul.mubr.msk.f32.gmra.mxu0 %vm45_vm2, %v873_v19 }
 0x21e   :  { %v874_v20 = vpop.trf.xlu0 }
 0x21f   :  { %1714 = vmatprep.mubr.msk.f32.mxu0 %vm45_vm2, %v874_v20 }
 0x222   :  { %v875_v21 = vpop.trf.xlu0 }
 0x223   :  { %1715 = vmatmul.mubr.msk.f32.gmra.mxu0 %vm45_vm2, %v875_v21 }
 0x224   :  { %1754 = vmatprep.mubr.msk.f32.mxu0 %vm1945_vm0, %v1944_v0 }
 0x264   :  { %v418_v22 = vpop.xlane.xlu0 %417 }
 0x265   :  { %v434_v23 = vsub.f32 %v2082_v51, %v418_v22 }
 0x266   :  { %v415_v24 = vpop.xlane.xlu1 %414 }
 0x267   :  { %v465_v25 = vmul.f32 1.442695, %v434_v23 }
 0x268   :  { %v391_v57 = vpop.xlane.xlu0 %390 }
 0x269   :  { %1767 = vpow2.f32 %v465_v25  ;;  %v425_v1 = vsub.f32 %v2068_v44, %v391_v57 }
 0x26a   :  { %v412_v26 = vpop.xlane.xlu1 %411 }
 0x26b   :  { %v432_v27 = vsub.f32 %v2078_v49, %v412_v26  ;;  %v447_v7 = vmul.f32 1.442695, %v425_v1 }
 0x26c   :  { %v385_v9 = vpop.xlane.xlu0 %384 }
 0x26d   :  { %v461_v28 = vmul.f32 1.442695, %v432_v27 }
 0x26e   :  { %v409_v29 = vpop.xlane.xlu1 %408 }
 0x26f   :  { %1769 = vpow2.f32 %v461_v28  ;;  %v431_v30 = vsub.f32 %v2080_v50, %v409_v29 }
 0x270   :  { %v379_v17 = vpop.xlane.xlu0 %378 }
 0x271   :  { %v459_v31 = vmul.f32 1.442695, %v431_v30 }
 0x272   :  { %v406_v32 = vpop.xlane.xlu1 %405 }
 0x273   :  { %1771 = vpow2.f32 %v459_v31  ;;  %v430_v33 = vsub.f32 %v2074_v47, %v406_v32  ;;  %v433_v47 = vsub.f32 %v2086_v53, %v415_v24 }
 0x274   :  { %v373_v24 = vpop.xlane.xlu0 %372 }
 0x275   :  { %v457_v36 = vmul.f32 1.442695, %v430_v33  ;;  %v419_v26 = vsub.f32 %v2047_v38, %v373_v24 }
 0x276   :  { %v2140_v37 = vpop.eup %1767  ;;  %v403_v51 = vpop.xlane.xlu1 %402 }
 0x277   :  { %1773 = vpow2.f32 %v457_v36  ;;  %v429_v52 = vsub.f32 %v2076_v48, %v403_v51  ;;  %v512_v49 = vsel %vm370_vm5, %v2140_v37, 0.0  ;;  %v435_v29 = vmul.f32 1.442695, %v419_v26 }
 0x278   :  { %513 = vadd.xlane.f32.xlu1 %v512_v49 }
 0x279   :  { %v455_v54 = vmul.f32 1.442695, %v429_v52 }
 0x27a   :  { %v400_v55 = vpop.xlane.xlu1 %399 }
 0x27b   :  { %1775 = vpow2.f32 %v455_v54  ;;  %v428_v50 = vsub.f32 %v2070_v45, %v400_v55  ;;  %v463_v45 = vmul.f32 1.442695, %v433_v47 }
 0x27c   :  { %v2146_v56 = vpop.eup %1769 }
 0x27d   :  { %v453_v58 = vmul.f32 1.442695, %v428_v50  ;;  %v506_v59 = vsel %vm370_vm5, %v2146_v56, 0.0 }
 0x27e   :  { %507 = vadd.xlane.f32.xlu1 %v506_v59  ;;  %v397_v48 = vpop.xlane.xlu1 %396  ;;  %v2151_v60 = vpop.f32.mrf.mxu0 }
 0x27f   :  { %1777 = vpow2.f32 %v453_v58  ;;  %v427_v61 = vsub.f32 %v2072_v46, %v397_v48 }
 0x280   :  { %v2154_v62 = vpop.eup %1771  ;;  %v1650_v63 = vpop.f32.mrf.mxu0 }
 0x281   :  { %v451_v2 = vmul.f32 1.442695, %v427_v61  ;;  %v503_v53 = vsel %vm370_vm5, %v2154_v62, 0.0 }
 0x282   :  { %504 = vadd.xlane.f32.xlu0 %v503_v53  ;;  %v394_v3 = vpop.xlane.xlu1 %393  ;;  %v2159_v4 = vpop.f32.mrf.mxu0 }
 0x283   :  { %1779 = vpow2.f32 %v451_v2  ;;  %v426_v5 = vsub.f32 %v2066_v43, %v394_v3  ;;  %v423_v43 = vsub.f32 %v2064_v42, %v385_v9  ;;  %v421_v42 = vsub.f32 %v2059_v40, %v379_v17 }
 0x284   :  { %v2162_v6 = vpop.eup %1773  ;;  %v1690_v46 = vpop.f32.mrf.mxu0  ;;  %1781 = vpow2.f32 %v463_v45 }
 0x285   :  { %v449_v8 = vmul.f32 1.442695, %v426_v5  ;;  %v500_v44 = vsel %vm370_vm5, %v2162_v6, 0.0  ;;  %v443_v18 = vmul.f32 1.442695, %v423_v43 }
 0x286   :  { %501 = vadd.xlane.f32.xlu1 %v500_v44  ;;  %v388_v10 = vpop.xlane.xlu1 %387 }
 0x287   :  { %1783 = vpow2.f32 %v449_v8  ;;  %v424_v11 = vsub.f32 %v2062_v41, %v388_v10 }
 0x288   :  { %v2167_v12 = vpop.eup %1775  ;;  %1785 = vpow2.f32 %v447_v7 }
 0x289   :  { %v445_v13 = vmul.f32 1.442695, %v424_v11  ;;  %v497_v14 = vsel %vm370_vm5, %v2167_v12, 0.0 }
 0x28a   :  { %498 = vadd.xlane.f32.xlu0 %v497_v14  ;;  %v382_v15 = vpop.xlane.xlu1 %381 }
 0x28b   :  { %1787 = vpow2.f32 %v445_v13  ;;  %v422_v19 = vsub.f32 %v2053_v39, %v382_v15  ;;  %v439_v39 = vmul.f32 1.442695, %v421_v42 }
 0x28c   :  { %v2172_v16 = vpop.eup %1777  ;;  %1789 = vpow2.f32 %v443_v18 }
 0x28d   :  { %v494_v41 = vsel %vm370_vm5, %v2172_v16, 0.0  ;;  %v441_v21 = vmul.f32 1.442695, %v422_v19 }
 0x28e   :  { %495 = vadd.xlane.f32.xlu1 %v494_v41  ;;  %v376_v47 = vpop.xlane.xlu1 %375 }
 0x28f   :  { %1791 = vpow2.f32 %v441_v21  ;;  %v420_v58 = vsub.f32 %v2041_v35, %v376_v47 }
 0x290   :  { %v2177_v20 = vpop.eup %1779  ;;  %1793 = vpow2.f32 %v439_v39 }
 0x291   :  { %v491_v22 = vsel %vm370_vm5, %v2177_v20, 0.0  ;;  %v2182_v23 = vpop.eup %1781  ;;  %1795 = vpow2.f32 %v435_v29  ;;  %v437_v48 = vmul.f32 1.442695, %v420_v58 }
 0x292   :  { %492 = vadd.xlane.f32.xlu0 %v491_v22  ;;  %v509_v27 = vsel %vm370_vm5, %v2182_v23, 0.0 }
 0x293   :  { %1797 = vpow2.f32 %v437_v48 }
 0x294   :  { %v2184_v25 = vpop.eup %1783 }
 0x295   :  { %v488_v40 = vsel %vm370_vm5, %v2184_v25, 0.0  ;;  %v2191_v28 = vpop.eup %1785 }
 0x296   :  { %510 = vadd.xlane.f32.xlu0 %v509_v27  ;;  %489 = vadd.xlane.f32.xlu1 %v488_v40  ;;  %v485_v30 = vsel %vm370_vm5, %v2191_v28, 0.0 }
 0x298   :  { %v2195_v31 = vpop.eup %1787 }
 0x299   :  { %v482_v38 = vsel %vm370_vm5, %v2195_v31, 0.0  ;;  %v2199_v32 = vpop.eup %1789 }
 0x29a   :  { %486 = vadd.xlane.f32.xlu1 %v485_v30  ;;  %v479_v33 = vsel %vm370_vm5, %v2199_v32, 0.0 }
 0x29c   :  { %v2203_v36 = vpop.eup %1791 }
 0x29d   :  { %v476_v51 = vsel %vm370_vm5, %v2203_v36, 0.0  ;;  %v2207_v52 = vpop.eup %1793 }
 0x29e   :  { %483 = vadd.xlane.f32.xlu1 %v482_v38  ;;  %v473_v49 = vsel %vm370_vm5, %v2207_v52, 0.0  ;;  %v2211_v54 = vpop.eup %1795 }
 0x29f   :  { %v467_v50 = vsel %vm370_vm5, %v2211_v54, 0.0 }
 0x2a0   :  { %v2232_v2 = vpop.eup %1797 }
 0x2a1   :  { %v470_v3 = vsel %vm370_vm5, %v2232_v2, 0.0 }
 0x2a2   :  { %480 = vadd.xlane.f32.xlu1 %v479_v33 }
 0x2a6   :  { %477 = vadd.xlane.f32.xlu1 %v476_v51 }
 0x2aa   :  { %474 = vadd.xlane.f32.xlu1 %v473_v49 }
 0x2ab   :  { %v2213_v55 = vpop.f32.mrf.mxu0 }
 0x2ac   :  { %826 = vrot.lane.b32.xlu0 %v2159_v4, %s1946_s28 }
 0x2ad   :  { %v2219_v57 = vpop.f32.mrf.mxu0 }
 0x2ae   :  { %468 = vadd.xlane.f32.xlu1 %v467_v50  ;;  %v1072_v22 = vsel %vm370_vm5, %v2219_v57, -inf }
 0x2b3   :  { %v2222_v59 = vpop.f32.mrf.mxu0 }
 0x2b5   :  { %v2224_v61 = vpop.f32.mrf.mxu0 }
 0x2b6   :  { %v1078_v21 = vsel %vm370_vm5, %v2224_v61, -inf }
 0x2bb   :  { %v2226_v63 = vpop.f32.mrf.mxu0 }
 0x2bd   :  { %v2228_v45 = vpop.f32.mrf.mxu0 }
 0x2be   :  { %v1084_v42 = vsel %vm370_vm5, %v2228_v45, -inf }
 0x2c3   :  { %v2230_v1 = vpop.f32.mrf.mxu0 }
 0x2c5   :  { %v2234_v53 = vpop.f32.mrf.mxu0 }
 0x2c6   :  { %v1090_v19 = vsel %vm370_vm5, %v2234_v53, -inf }
 0x2cb   :  { %471 = vadd.xlane.f32.xlu0 %v470_v3  ;;  %v2238_v35 = vpop.f32.mrf.mxu0 }
 0x2cc   :  { %v1099_v17 = vsel %vm370_vm5, %v2238_v35, -inf }
 0x2cd   :  { %v2240_v5 = vpop.f32.mrf.mxu0 }
 0x2ce   :  { %v1096_v18 = vsel %vm370_vm5, %v2240_v5, -inf }
 0x2d3   :  { %v2242_v46 = vpop.f32.mrf.mxu0 }
 0x2d4   :  { %v1105_v14 = vsel %vm370_vm5, %v2242_v46, -inf }
 0x2d5   :  { %v2244_v7 = vpop.f32.mrf.mxu0 }
 0x2d6   :  { %v1102_v15 = vsel %vm370_vm5, %v2244_v7, -inf }
 0x2db   :  { %v2246_v8 = vpop.f32.mrf.mxu0 }
 0x2dc   :  { %v1111_v43 = vsel %vm370_vm5, %v2246_v8, -inf }
 0x2dd   :  { %v2248_v44 = vpop.f32.mrf.mxu0 }
 0x2de   :  { %v1108_v13 = vsel %vm370_vm5, %v2248_v44, -inf }
 0x2e3   :  { %v2250_v9 = vpop.f32.mrf.mxu0 }
 0x2e5   :  { %v2252_v10 = vpop.f32.mrf.mxu0 }
 0x2e6   :  { %v1114_v11 = vsel %vm370_vm5, %v2252_v10, -inf }
 0x2e7   :  { %1115 = vmax.xlane.f32.xlu0 %v1114_v11 }
 0x2eb   :  { %1112 = vmax.xlane.f32.xlu0 %v1111_v43 }
 0x2ef   :  { %1109 = vmax.xlane.f32.xlu0 %v1108_v13 }
 0x2f3   :  { %1106 = vmax.xlane.f32.xlu0 %v1105_v14 }
 0x2f7   :  { %1103 = vmax.xlane.f32.xlu0 %v1102_v15 }
 0x2fb   :  { %1100 = vmax.xlane.f32.xlu0 %v1099_v17 }
 0x2ff   :  { %1097 = vmax.xlane.f32.xlu0 %v1096_v18 }
 0x301   :  { %v514_v41 = vpop.xlane.xlu1 %513 }
 0x302   :  { %1799 = vrcp.f32 %v514_v41 }
 0x303   :  { %1091 = vmax.xlane.f32.xlu0 %v1090_v19 }
 0x307   :  { %1085 = vmax.xlane.f32.xlu0 %v1084_v42  ;;  %v508_v29 = vpop.xlane.xlu1 %507 }
 0x30b   :  { %1079 = vmax.xlane.f32.xlu0 %v1078_v21  ;;  %v505_v26 = vpop.xlane.xlu0 %504 }
 0x30f   :  { %v1800_v24 = vpop.eup %1799  ;;  %1073 = vmax.xlane.f32.xlu0 %v1072_v22  ;;  %v502_v51 = vpop.xlane.xlu1 %501  ;;  %v1093_v22 = vsel %vm370_vm5, %v2230_v1, -inf }
 0x310   :  { %v546_v39 = vmul.f32 %v1800_v24, %v2140_v37 }
 0x312   :  { %1652 = vmatpush3.xpose.msk.msra.mxu1 %vm370_vm5, %v546_v39  ;;  %v1087_v39 = vsel %vm370_vm5, %v2226_v63, -inf }
 0x313   :  { %1653 = vmatprep.subr.mxu1 %v1944_v0  ;;  %v499_v27 = vpop.xlane.xlu0 %498 }
 0x317   :  { %v496_v37 = vpop.xlane.xlu1 %495 }
 0x31b   :  { %v493_v40 = vpop.xlane.xlu0 %492 }
 0x31f   :  { %v511_v30 = vpop.xlane.xlu0 %510  ;;  %v490_v50 = vpop.xlane.xlu1 %489 }
 0x320   :  { %1801 = vrcp.f32 %v511_v30 }
 0x321   :  { %1803 = vrcp.f32 %v508_v29 }
 0x322   :  { %1805 = vrcp.f32 %v505_v26 }
 0x323   :  { %v827_v38 = vpop.permute.xlu0 %826  ;;  %1807 = vrcp.f32 %v502_v51  ;;  %v487_v3 = vpop.xlane.xlu1 %486 }
 0x324   :  { %v2280_v33 = vmax.f32 %v2159_v4, %v827_v38  ;;  %1809 = vrcp.f32 %v499_v27 }
 0x325   :  { %1811 = vrcp.f32 %v496_v37 }
 0x326   :  { %831 = vrot.lane.b32.xlu1 %v2280_v33, %s1942_s21  ;;  %1813 = vrcp.f32 %v493_v40 }
 0x327   :  { %1815 = vrcp.f32 %v490_v50 }
 0x328   :  { %1817 = vrcp.f32 %v487_v3 }
 0x32d   :  { %v1802_v49 = vpop.eup %1801 }
 0x32e   :  { %v544_v47 = vmul.f32 %v1802_v49, %v2182_v23  ;;  %v1804_v58 = vpop.eup %1803  ;;  %v484_v23 = vpop.xlane.xlu1 %483 }
 0x32f   :  { %v542_v4 = vmul.f32 %v1804_v58, %v2146_v56  ;;  %v1806_v48 = vpop.eup %1805  ;;  %1819 = vrcp.f32 %v484_v23 }
 0x330   :  { %1654 = vmatpush3.xpose.msk.msra.mxu1 %vm370_vm5, %v544_v47  ;;  %v540_v11 = vmul.f32 %v1806_v48, %v2154_v62  ;;  %v1808_v43 = vpop.eup %1807 }
 0x331   :  { %1655 = vmatprep.subr.mxu1 %v1944_v0  ;;  %v538_v13 = vmul.f32 %v1808_v43, %v2162_v6  ;;  %v1810_v14 = vpop.eup %1809 }
 0x332   :  { %v536_v56 = vmul.f32 %v1810_v14, %v2167_v12  ;;  %v1812_v15 = vpop.eup %1811  ;;  %v481_v17 = vpop.xlane.xlu1 %480  ;;  %v1117_v12 = vsel %vm370_vm5, %v2250_v9, -inf }
 0x333   :  { %v534_v62 = vmul.f32 %v1812_v15, %v2172_v16  ;;  %v1814_v18 = vpop.eup %1813  ;;  %1821 = vrcp.f32 %v481_v17 }
 0x334   :  { %1656 = vmatpush3.xpose.msk.msra.mxu1 %vm370_vm5, %v542_v4  ;;  %v532_v19 = vmul.f32 %v1814_v18, %v2177_v20  ;;  %v1816_v41 = vpop.eup %1815 }
 0x335   :  { %1657 = vmatprep.subr.mxu1 %v1944_v0  ;;  %v530_v16 = vmul.f32 %v1816_v41, %v2184_v25  ;;  %v1818_v42 = vpop.eup %1817 }
 0x336   :  { %v478_v6 = vpop.xlane.xlu1 %477  ;;  %v528_v20 = vmul.f32 %v1818_v42, %v2191_v28  ;;  %v1081_v28 = vsel %vm370_vm5, %v2222_v59, -inf }
 0x337   :  { %1823 = vrcp.f32 %v478_v6  ;;  %v1947_v6 = vmov 0  }
 0x338   :  { %1658 = vmatpush3.xpose.msk.msra.mxu1 %vm370_vm5, %v540_v11  ;;  %1765 = vset.pattern.permute.xlu1 %v1947_v6 }
 0x339   :  { %1659 = vmatprep.subr.mxu1 %v1944_v0  ;;  %1766 = vset.pattern.permute.xlu0 %v1947_v6  ;;  %v37_v6 = vld [vmem:[%s2502_s4] sm:$0xf] }
 0x33a   :  { %v475_v21 = vpop.xlane.xlu1 %474 }
 0x33b   :  { %1825 = vrcp.f32 %v475_v21 }
 0x33c   :  { %1660 = vmatpush3.xpose.msk.msra.mxu1 %vm370_vm5, %v538_v13  ;;  %v1820_v24 = vpop.eup %1819 }
 0x33d   :  { %1661 = vmatprep.subr.mxu1 %v1944_v0  ;;  %v526_v25 = vmul.f32 %v1820_v24, %v2195_v31  ;;  %v1075_v31 = vsel %vm370_vm5, %v2213_v55, -inf }
 0x33e   :  { %v469_v27 = vpop.xlane.xlu1 %468 }
 0x340   :  { %1662 = vmatpush3.xpose.msk.msra.mxu1 %vm370_vm5, %v536_v56  ;;  %v1822_v26 = vpop.eup %1821 }
 0x341   :  { %1663 = vmatprep.subr.mxu1 %v1944_v0  ;;  %v524_v29 = vmul.f32 %v1822_v26, %v2199_v32 }
 0x344   :  { %1664 = vmatpush3.xpose.msk.msra.mxu1 %vm370_vm5, %v534_v62  ;;  %v1824_v30 = vpop.eup %1823 }
 0x345   :  { %1665 = vmatprep.subr.mxu1 %v1944_v0  ;;  %v522_v38 = vmul.f32 %v1824_v30, %v2203_v36 }
 0x348   :  { %1666 = vmatpush3.xpose.msk.msra.mxu1 %vm370_vm5, %v532_v19  ;;  %v1826_v51 = vpop.eup %1825 }
 0x349   :  { %1667 = vmatprep.subr.mxu1 %v1944_v0  ;;  %v520_v37 = vmul.f32 %v1826_v51, %v2207_v52 }
 0x34a   :  { %1118 = vmax.xlane.f32.xlu1 %v1117_v12 }
 0x34c   :  { %1668 = vmatpush3.xpose.msk.msra.mxu1 %vm370_vm5, %v530_v16 }
 0x34d   :  { %1669 = vmatprep.subr.mxu1 %v1944_v0 }
 0x34e   :  { %1094 = vmax.xlane.f32.xlu1 %v1093_v22 }
 0x350   :  { %1670 = vmatpush3.xpose.msk.msra.mxu1 %vm370_vm5, %v528_v20 }
 0x351   :  { %1671 = vmatprep.subr.mxu1 %v1944_v0 }
 0x352   :  { %1088 = vmax.xlane.f32.xlu1 %v1087_v39 }
 0x354   :  { %v472_v40 = vpop.xlane.xlu0 %471  ;;  %1672 = vmatpush3.xpose.msk.msra.mxu1 %vm370_vm5, %v526_v25 }
 0x355   :  { %1827 = vrcp.f32 %v472_v40  ;;  %1673 = vmatprep.subr.mxu1 %v1944_v0 }
 0x356   :  { %1082 = vmax.xlane.f32.xlu1 %v1081_v28  ;;  %1829 = vrcp.f32 %v469_v27 }
 0x358   :  { %1674 = vmatpush3.xpose.msk.msra.mxu1 %vm370_vm5, %v524_v29 }
 0x359   :  { %1675 = vmatprep.subr.mxu1 %v1944_v0 }
 0x35a   :  { %1076 = vmax.xlane.f32.xlu1 %v1075_v31 }
 0x35c   :  { %1676 = vmatpush3.xpose.msk.msra.mxu1 %vm370_vm5, %v522_v38 }
 0x35d   :  { %1677 = vmatprep.subr.mxu1 %v1944_v0 }
 0x360   :  { %1678 = vmatpush3.xpose.msk.msra.mxu1 %vm370_vm5, %v520_v37 }
 0x361   :  { %1679 = vmatprep.subr.mxu1 %v1944_v0 }
 0x362   :  { %v1828_v32 = vpop.eup %1827 }
 0x363   :  { %v518_v49 = vmul.f32 %v1828_v32, %v2232_v2  ;;  %v1830_v50 = vpop.eup %1829 }
 0x364   :  { %v516_v36 = vmul.f32 %v1830_v50, %v2211_v54 }
 0x365   :  { %1680 = vmatpush3.xpose.msk.msra.mxu1 %vm370_vm5, %v518_v49 }
 0x366   :  { %1681 = vmatprep.subr.mxu1 %v1944_v0 }
 0x369   :  { %1682 = vmatpush3.xpose.msk.msra.mxu1 %vm370_vm5, %v516_v36 }
 0x36a   :  { %1717 = vmatprep.subr.mxu1 %v1944_v0 }
 0x36c   :  { %1684 = vmatmul.mubr.msk.f32.vlgmr.msra.gmra.mxu1 %vm370_vm5, %v2151_v60 }
 0x36d   :  { %1719 = vmatprep.mubr.msk.f32.mxu1 %vm1945_vm0, %v1944_v0 }
 0x370   :  { %v1116_v52 = vpop.xlane.xlu0 %1115 }
 0x371   :  { %v1134_v2 = vsub.f32 %v2252_v10, %v1116_v52 }
 0x373   :  { %v1164_v47 = vmul.f32 1.442695, %v1134_v2 }
 0x374   :  { %v2344_v58 = vpop.xlane.xlu0 %1112 }
 0x375   :  { %1831 = vpow2.f32 %v1164_v47  ;;  %v1133_v30 = vsub.f32 %v2246_v8, %v2344_v58 }
 0x377   :  { %v1162_v51 = vmul.f32 1.442695, %v1133_v30 }
 0x378   :  { %v1110_v4 = vpop.xlane.xlu0 %1109 }
 0x379   :  { %v1132_v54 = vsub.f32 %v2248_v44, %v1110_v4 }
 0x37b   :  { %v1160_v48 = vmul.f32 1.442695, %v1132_v54 }
 0x37c   :  { %v2347_v3 = vpop.xlane.xlu0 %1106 }
 0x37d   :  { %1833 = vpow2.f32 %v1160_v48  ;;  %v1131_v37 = vsub.f32 %v2242_v46, %v2347_v3 }
 0x37f   :  { %v1158_v50 = vmul.f32 1.442695, %v1131_v37 }
 0x380   :  { %v1104_v11 = vpop.xlane.xlu0 %1103 }
 0x381   :  { %v1130_v60 = vsub.f32 %v2244_v7, %v1104_v11 }
 0x382   :  { %v2350_v43 = vpop.eup %1831 }
 0x383   :  { %v1156_v23 = vmul.f32 1.442695, %v1130_v60  ;;  %v1210_v10 = vsel %vm370_vm5, %v2350_v43, 0.0 }
 0x384   :  { %1211 = vadd.xlane.f32.xlu0 %v1210_v10  ;;  %v2354_v13 = vpop.xlane.xlu0 %1100 }
 0x385   :  { %1835 = vpow2.f32 %v1156_v23  ;;  %v1129_v36 = vsub.f32 %v2238_v35, %v2354_v13 }
 0x387   :  { %v1154_v2 = vmul.f32 1.442695, %v1129_v36 }
 0x388   :  { %v1098_v14 = vpop.xlane.xlu0 %1097 }
 0x389   :  { %v1128_v44 = vsub.f32 %v2240_v5, %v1098_v14 }
 0x38a   :  { %v2357_v56 = vpop.eup %1833 }
 0x38b   :  { %v1152_v15 = vmul.f32 1.442695, %v1128_v44  ;;  %v1204_v17 = vsel %vm370_vm5, %v2357_v56, 0.0 }
 0x38c   :  { %1205 = vadd.xlane.f32.xlu0 %v1204_v17  ;;  %v1092_v7 = vpop.xlane.xlu0 %1091 }
 0x38d   :  { %1837 = vpow2.f32 %v1152_v15  ;;  %v1126_v62 = vsub.f32 %v2234_v53, %v1092_v7 }
 0x38f   :  { %v1148_v18 = vmul.f32 1.442695, %v1126_v62 }
 0x390   :  { %v1086_v19 = vpop.xlane.xlu0 %1085 }
 0x391   :  { %1839 = vpow2.f32 %v1148_v18  ;;  %v1124_v41 = vsub.f32 %v2228_v45, %v1086_v19 }
 0x392   :  { %v2363_v5 = vpop.eup %1835 }
 0x393   :  { %v1144_v12 = vmul.f32 1.442695, %v1124_v41  ;;  %v1198_v16 = vsel %vm370_vm5, %v2363_v5, 0.0 }
 0x394   :  { %1199 = vadd.xlane.f32.xlu0 %v1198_v16  ;;  %v1080_v42 = vpop.xlane.xlu0 %1079 }
 0x395   :  { %1841 = vpow2.f32 %v1144_v12  ;;  %v1122_v21 = vsub.f32 %v2224_v61, %v1080_v42 }
 0x397   :  { %v1140_v53 = vmul.f32 1.442695, %v1122_v21 }
 0x398   :  { %v1074_v22 = vpop.xlane.xlu0 %1073  ;;  %v832_v20 = vpop.permute.xlu1 %831 }
 0x399   :  { %1843 = vpow2.f32 %v1140_v53  ;;  %v1120_v24 = vsub.f32 %v2219_v57, %v1074_v22  ;;  %v834_v39 = vmax.f32 %v2280_v33, %v832_v20 }
 0x39a   :  { %v2370_v45 = vpop.eup %1837 }
 0x39b   :  { %v1136_v25 = vmul.f32 1.442695, %v1120_v24  ;;  %1718 = vmatpush3.msk.msra.mxu1 %vm551_vm3, %v834_v39  ;;  %v1192_v26 = vsel %vm370_vm5, %v2370_v45, 0.0 }
 0x39c   :  { %1193 = vadd.xlane.f32.xlu0 %v1192_v26  ;;  %1720 = vmatmul.mubr.msk.f32.vlgmr.msra.gmra.mxu1 %vm547_vm4, %v2039_v34 }
 0x39d   :  { %1845 = vpow2.f32 %v1136_v25 }
 0x39e   :  { %v2377_v61 = vpop.eup %1839 }
 0x39f   :  { %v1186_v57 = vsel %vm370_vm5, %v2377_v61, 0.0 }
 0x3a0   :  { %1187 = vadd.xlane.f32.xlu0 %v1186_v57 }
 0x3a2   :  { %v2381_v33 = vpop.eup %1841 }
 0x3a3   :  { %v1180_v27 = vsel %vm370_vm5, %v2381_v33, 0.0 }
 0x3a4   :  { %1181 = vadd.xlane.f32.xlu0 %v1180_v27 }
 0x3a6   :  { %v2385_v40 = vpop.eup %1843 }
 0x3a7   :  { %v1174_v28 = vsel %vm370_vm5, %v2385_v40, 0.0 }
 0x3a8   :  { %1175 = vadd.xlane.f32.xlu0 %v1174_v28 }
 0x3aa   :  { %v2389_v34 = vpop.eup %1845 }
 0x3ab   :  { %v1168_v29 = vsel %vm370_vm5, %v2389_v34, 0.0 }
 0x3ac   :  { %1169 = vadd.xlane.f32.xlu0 %v1168_v29 }
 0x3d3   :  { %v1119_v31 = vpop.xlane.xlu1 %1118 }
 0x3d4   :  { %v1135_v38 = vsub.f32 %v2250_v9, %v1119_v31 }
 0x3d6   :  { %v1166_v32 = vmul.f32 1.442695, %v1135_v38 }
 0x3d7   :  { %v1095_v49 = vpop.xlane.xlu1 %1094 }
 0x3d8   :  { %1847 = vpow2.f32 %v1166_v32  ;;  %v1127_v8 = vsub.f32 %v2230_v1, %v1095_v49 }
 0x3d9   :  { %1849 = vpow2.f32 %v1162_v51 }
 0x3da   :  { %1851 = vpow2.f32 %v1158_v50  ;;  %v1150_v9 = vmul.f32 1.442695, %v1127_v8 }
 0x3db   :  { %v1089_v52 = vpop.xlane.xlu1 %1088  ;;  %1853 = vpow2.f32 %v1154_v2 }
 0x3dc   :  { %v1125_v58 = vsub.f32 %v2226_v63, %v1089_v52  ;;  %1855 = vpow2.f32 %v1150_v9 }
 0x3de   :  { %v1146_v46 = vmul.f32 1.442695, %v1125_v58 }
 0x3df   :  { %v1083_v47 = vpop.xlane.xlu1 %1082 }
 0x3e0   :  { %v1123_v54 = vsub.f32 %v2222_v59, %v1083_v47  ;;  %1857 = vpow2.f32 %v1146_v46 }
 0x3e2   :  { %v1142_v35 = vmul.f32 1.442695, %v1123_v54 }
 0x3e3   :  { %v1077_v11 = vpop.xlane.xlu1 %1076 }
 0x3e4   :  { %v1121_v60 = vsub.f32 %v2213_v55, %v1077_v11  ;;  %1859 = vpow2.f32 %v1142_v35 }
 0x3e5   :  { %v1848_v4 = vpop.eup %1847 }
 0x3e6   :  { %v1213_v48 = vsel %vm370_vm5, %v1848_v4, 0.0  ;;  %v1850_v3 = vpop.eup %1849  ;;  %v1138_v63 = vmul.f32 1.442695, %v1121_v60 }
 0x3e7   :  { %1214 = vadd.xlane.f32.xlu1 %v1213_v48  ;;  %v1207_v1 = vsel %vm370_vm5, %v1850_v3, 0.0  ;;  %v2406_v23 = vpop.eup %1851 }
 0x3e8   :  { %v1201_v10 = vsel %vm370_vm5, %v2406_v23, 0.0  ;;  %v2410_v59 = vpop.eup %1853  ;;  %1861 = vpow2.f32 %v1138_v63 }
 0x3e9   :  { %v1195_v13 = vsel %vm370_vm5, %v2410_v59, 0.0  ;;  %v2414_v14 = vpop.eup %1855 }
 0x3ea   :  { %v1189_v55 = vsel %vm370_vm5, %v2414_v14, 0.0 }
 0x3eb   :  { %1208 = vadd.xlane.f32.xlu1 %v1207_v1 }
 0x3ed   :  { %v2418_v44 = vpop.eup %1857 }
 0x3ee   :  { %v1183_v15 = vsel %vm370_vm5, %v2418_v44, 0.0 }
 0x3ef   :  { %1202 = vadd.xlane.f32.xlu1 %v1201_v10 }
 0x3f1   :  { %v2422_v17 = vpop.eup %1859 }
 0x3f2   :  { %v1177_v7 = vsel %vm370_vm5, %v2422_v17, 0.0 }
 0x3f3   :  { %1196 = vadd.xlane.f32.xlu1 %v1195_v13 }
 0x3f5   :  { %v2426_v62 = vpop.eup %1861 }
 0x3f6   :  { %v1171_v18 = vsel %vm370_vm5, %v2426_v62, 0.0 }
 0x3f7   :  { %1190 = vadd.xlane.f32.xlu1 %v1189_v55 }
 0x3fb   :  { %1184 = vadd.xlane.f32.xlu1 %v1183_v15 }
 0x3ff   :  { %1178 = vadd.xlane.f32.xlu1 %v1177_v7 }
 0x403   :  { %1172 = vadd.xlane.f32.xlu1 %v1171_v18 }
 0x40d   :  { %v1212_v42 = vpop.xlane.xlu0 %1211 }
 0x414   :  { %40 = vperm.xlu1 %1765, %v37_v6  }
 0x415   :  { %v1206_v22 = vpop.xlane.xlu0 %1205 }
 0x41d   :  { %v1200_v57 = vpop.xlane.xlu0 %1199 }
 0x425   :  { %v1194_v51 = vpop.xlane.xlu0 %1193 }
 0x429   :  { %v1188_v52 = vpop.xlane.xlu0 %1187 }
 0x42c   :  { %v742_v19 = vpop.f32.mrf.mxu1 }
 0x42d   :  { %v1182_v54 = vpop.xlane.xlu0 %1181 }
 0x42e   :  { %v1685_v41 = vpop.f32.mrf.mxu1 }
 0x431   :  { %v1176_v35 = vpop.xlane.xlu0 %1175 }
 0x435   :  { %v1170_v63 = vpop.xlane.xlu0 %1169 }
 0x45c   :  { %v2433_v12 = vpop.f32.mrf.mxu1 }
 0x45e   :  { %v1721_v16 = vpop.f32.mrf.mxu1 }
 0x470   :  { %v1215_v21 = vpop.xlane.xlu1 %1214 }
 0x471   :  { %1863 = vrcp.f32 %v1215_v21 }
 0x472   :  { %1865 = vrcp.f32 %v1212_v42 }
 0x474   :  { %v1209_v53 = vpop.xlane.xlu1 %1208 }
 0x475   :  { %1867 = vrcp.f32 %v1209_v53 }
 0x476   :  { %1869 = vrcp.f32 %v1206_v22 }
 0x478   :  { %v1203_v20 = vpop.xlane.xlu1 %1202 }
 0x479   :  { %1871 = vrcp.f32 %v1203_v20 }
 0x47a   :  { %1873 = vrcp.f32 %v1200_v57 }
 0x47c   :  { %v1197_v24 = vpop.xlane.xlu1 %1196 }
 0x47d   :  { %1875 = vrcp.f32 %v1197_v24 }
 0x47e   :  { %v1864_v39 = vpop.eup %1863  ;;  %1877 = vrcp.f32 %v1194_v51 }
 0x47f   :  { %v1247_v25 = vmul.f32 %v1864_v39, %v1848_v4  ;;  %v1866_v26 = vpop.eup %1865 }
 0x480   :  { %v1191_v27 = vpop.xlane.xlu1 %1190  ;;  %v1245_v28 = vmul.f32 %v1866_v26, %v2350_v43 }
 0x481   :  { %1723 = vmatpush3.xpose.msk.msra.mxu0 %vm370_vm5, %v1247_v25  ;;  %1879 = vrcp.f32 %v1191_v27 }
 0x482   :  { %1724 = vmatprep.subr.mxu0 %v1944_v0  ;;  %v1868_v29 = vpop.eup %1867  ;;  %1881 = vrcp.f32 %v1188_v52 }
 0x483   :  { %v1243_v31 = vmul.f32 %v1868_v29, %v1850_v3  ;;  %v1870_v38 = vpop.eup %1869 }
 0x484   :  { %v1185_v30 = vpop.xlane.xlu1 %1184  ;;  %v1241_v32 = vmul.f32 %v1870_v38, %v2357_v56  ;;  %v1895_v56 = vld [vmem:[%s2498_s0] sm:$0xf] }
 0x485   :  { %1725 = vmatpush3.xpose.msk.msra.mxu0 %vm370_vm5, %v1245_v28  ;;  %1883 = vrcp.f32 %v1185_v30 }
 0x486   :  { %1726 = vmatprep.subr.mxu0 %v1944_v0  ;;  %v1872_v49 = vpop.eup %1871  ;;  %1885 = vrcp.f32 %v1182_v54 }
 0x487   :  { %v1239_v50 = vmul.f32 %v1872_v49, %v2406_v23  ;;  %v1874_v36 = vpop.eup %1873 }
 0x488   :  { %v1179_v37 = vpop.xlane.xlu1 %1178  ;;  %v1237_v9 = vmul.f32 %v1874_v36, %v2363_v5 }
 0x489   :  { %1727 = vmatpush3.xpose.msk.msra.mxu0 %vm370_vm5, %v1243_v31  ;;  %1887 = vrcp.f32 %v1179_v37 }
 0x48a   :  { %1728 = vmatprep.subr.mxu0 %v1944_v0  ;;  %v1876_v58 = vpop.eup %1875  ;;  %1889 = vrcp.f32 %v1176_v35 }
 0x48b   :  { %v1235_v4 = vmul.f32 %v1876_v58, %v2410_v59  ;;  %v1878_v46 = vpop.eup %1877 }
 0x48c   :  { %v1173_v43 = vpop.xlane.xlu1 %1172  ;;  %v1233_v48 = vmul.f32 %v1878_v46, %v2370_v45 }
 0x48d   :  { %1729 = vmatpush3.xpose.msk.msra.mxu0 %vm370_vm5, %v1241_v32  ;;  %1891 = vrcp.f32 %v1173_v43 }
 0x48e   :  { %1730 = vmatprep.subr.mxu0 %v1944_v0  ;;  %v1880_v3 = vpop.eup %1879  ;;  %1893 = vrcp.f32 %v1170_v63 }
 0x48f   :  { %v1231_v5 = vmul.f32 %v1880_v3, %v2414_v14  ;;  %v1882_v11 = vpop.eup %1881 }
 0x490   :  { %v2446_v2 = vpop.permute.xlu1 %40  ;;  %v1229_v60 = vmul.f32 %v1882_v11, %v2377_v61 }
 0x491   :  { %v743_v8 = vadd.f32 %v742_v19, %v2446_v2  ;;  %1731 = vmatpush3.xpose.msk.msra.mxu0 %vm370_vm5, %v1239_v50 }
 0x492   :  { %1732 = vmatprep.subr.mxu0 %v1944_v0  ;;  %v1884_v1 = vpop.eup %1883 }
 0x493   :  { %v746_v47 = vadd.f32 %v1895_v56, %v743_v8  ;;  %v1227_v45 = vmul.f32 %v1884_v1, %v2418_v44  ;;  %v1886_v23 = vpop.eup %1885 }
 0x494   :  { %v1225_v10 = vmul.f32 %v1886_v23, %v2381_v33 }
 0x495   :  { %747 = vst [vmem:[#allocation5] sm:$0xf] %v746_v47  ;;  %1733 = vmatpush3.xpose.msk.msra.mxu0 %vm370_vm5, %v1237_v9 }
 0x496   :  { %1734 = vmatprep.subr.mxu0 %v1944_v0  ;;  %v1888_v59 = vpop.eup %1887 }
 0x497   :  { %v1223_v61 = vmul.f32 %v1888_v59, %v2422_v17  ;;  %v1890_v13 = vpop.eup %1889 }
 0x498   :  { %v1221_v14 = vmul.f32 %v1890_v13, %v2385_v40 }
 0x499   :  { %1735 = vmatpush3.xpose.msk.msra.mxu0 %vm370_vm5, %v1235_v4 }
 0x49a   :  { %1736 = vmatprep.subr.mxu0 %v1944_v0  ;;  %v1892_v55 = vpop.eup %1891 }
 0x49b   :  { %v1219_v33 = vmul.f32 %v1892_v55, %v2426_v62  ;;  %v1894_v44 = vpop.eup %1893  ;;  %v1896_v62 = vld [vmem:[%s2498_s0 + $0x4] sm:$0xf] }
 0x49c   :  { %v1217_v15 = vmul.f32 %v1894_v44, %v2389_v34 }
 0x49d   :  { %1737 = vmatpush3.xpose.msk.msra.mxu0 %vm370_vm5, %v1233_v48 }
 0x49e   :  { %1738 = vmatprep.subr.mxu0 %v1944_v0 }
 0x4a1   :  { %1739 = vmatpush3.xpose.msk.msra.mxu0 %vm370_vm5, %v1231_v5 }
 0x4a2   :  { %1740 = vmatprep.subr.mxu0 %v1944_v0 }
 0x4a5   :  { %1741 = vmatpush3.xpose.msk.msra.mxu0 %vm370_vm5, %v1229_v60 }
 0x4a6   :  { %1742 = vmatprep.subr.mxu0 %v1944_v0 }
 0x4a9   :  { %1743 = vmatpush3.xpose.msk.msra.mxu0 %vm370_vm5, %v1227_v45 }
 0x4aa   :  { %1744 = vmatprep.subr.mxu0 %v1944_v0 }
 0x4ad   :  { %1745 = vmatpush3.xpose.msk.msra.mxu0 %vm370_vm5, %v1225_v10 }
 0x4ae   :  { %1746 = vmatprep.subr.mxu0 %v1944_v0 }
 0x4b1   :  { %1747 = vmatpush3.xpose.msk.msra.mxu0 %vm370_vm5, %v1223_v61 }
 0x4b2   :  { %1748 = vmatprep.subr.mxu0 %v1944_v0 }
 0x4b5   :  { %1749 = vmatpush3.xpose.msk.msra.mxu0 %vm370_vm5, %v1221_v14 }
 0x4b6   :  { %1750 = vmatprep.subr.mxu0 %v1944_v0 }
 0x4b9   :  { %1751 = vmatpush3.xpose.msk.msra.mxu0 %vm370_vm5, %v1219_v33 }
 0x4ba   :  { %1752 = vmatprep.subr.mxu0 %v1944_v0 }
 0x4bd   :  { %1753 = vmatpush3.xpose.msk.msra.mxu0 %vm370_vm5, %v1217_v15 }
 0x4c0   :  { %1755 = vmatmul.mubr.msk.f32.vlgmr.msra.gmra.mxu0 %vm370_vm5, %v2433_v12 }
 0x580   :  { %v1438_v40 = vpop.f32.mrf.mxu0 }
 0x581   :  { %v1439_v17 = vadd.f32 %v1438_v40, %v2446_v2 }
 0x582   :  { %v1756_v7 = vpop.f32.mrf.mxu0 }
 0x583   :  { %v1442_v18 = vadd.f32 %v1896_v62, %v1439_v17 }
 0x585   :  { %1444 = vst [vmem:[#allocation5 + $0x4] sm:$0xf] %v1442_v18 }
 0x586   :  { %1928 = shalt.err (!%p1925_p9)
}
 0x587   :  { %1456 = dma.vmem_to_hbm [thread:$0]  %s1451_s10, 128, %s2503_s5, [#allocation4], %s1942_s21, %s1942_s21, %s1943_s22  }
 0x588   :  { %1939 = dma.done.wait [#allocation4], 128  }
 0x589   :  { %1940 = vsyncadd [#allocation4], 4294967168 }
 0x58a   :  { %1460 = vsyncpa [#allocation3], 1 }
 0x58b   :  { %1461 = vsyncpa [#allocation4], 1 }

</bundles_post_ra>
